<compile_context>
chip_gen: v7x
topology: tpu7x:2x2x1
jax: 0.10.0
libtpu: 0.0.40
codegen_flags: <defaults>
</compile_context>

<pallas_src>
import functools

import jax
import jax.numpy as jnp
from jax.experimental import pallas as pl
from jax.experimental.pallas import tpu as pltpu

INPUT_SIZE = 7
HIDDEN_SIZE = 16
OUTPUT_SIZE = 7
SEQ_LEN = 8


def rnn_kernel(x_ref, w1x_ref, w1h_ref, b1_ref, w2_ref, b2_ref, h0_ref,
               y_ref, h_out_ref, *, seq_len):
    # Load the recurrent weights once; they stay live for the whole unrolled loop.
    w1x = w1x_ref[...]          # (I, H)
    w1h = w1h_ref[...]          # (H, H)
    b1 = b1_ref[...]            # (1, H)

    h = h0_ref[...]             # (1, H)

    # Fully unrolled recurrence (T is small and static): no grid-step overhead,
    # no per-step DMA, and full scheduling visibility for the compiler.
    for t in range(seq_len):
        x = x_ref[pl.ds(t, 1), :]                                   # (1, I)
        pre1 = (jnp.dot(x, w1x, preferred_element_type=jnp.float32)
                + jnp.dot(h, w1h, preferred_element_type=jnp.float32)
                + b1)
        h = jnp.maximum(pre1, 0.0)                                  # (1, H)

    # Output projection only for the final step (matches the PyTorch module,
    # which only returns y_t from the last iteration).
    pre2 = (jnp.dot(h, w2_ref[...], preferred_element_type=jnp.float32)
            + b2_ref[...])
    y_ref[...] = jnp.maximum(pre2, 0.0)                             # (1, O)
    h_out_ref[...] = h                                              # (1, H)


def rr_word_net_forward(X, W1, b1, W2, b2, h0):
    """X: (T, I) f32; W1: (H, I+H) (PyTorch nn.Linear layout); W2: (O, H); h0: (1, H)."""
    T, I = X.shape
    H = W1.shape[0]
    O = W2.shape[0]

    # Split and pre-transpose weights for row-vector @ matrix matmuls.
    W1x = jnp.transpose(W1[:, :I])        # (I, H)
    W1h = jnp.transpose(W1[:, I:])        # (H, H)
    W2t = jnp.transpose(W2)               # (H, O)
    b1r = b1.reshape(1, H)
    b2r = b2.reshape(1, O)

    # No grid: every operand is a whole-array VMEM-resident block (one DMA each),
    # total footprint < 16 KB, far below VMEM limits on v5e/v6e/v7x.
    vmem = pl.BlockSpec(memory_space=pltpu.MemorySpace.VMEM)

    y, h = pl.pallas_call(
        functools.partial(rnn_kernel, seq_len=T),
        out_shape=(
            jax.ShapeDtypeStruct((1, O), jnp.float32),
            jax.ShapeDtypeStruct((1, H), jnp.float32),
        ),
        in_specs=[vmem] * 7,
        out_specs=(vmem, vmem),
    )(X, W1x, W1h, b1r, W2t, b2r, h0)
    return y, h


def rr_word_net_reference(X, W1, b1, W2, b2, h0):
    h = h0
    y = None
    for t in range(X.shape[0]):
        combined = jnp.concatenate([X[t][None, :], h], axis=1)
        h = jax.nn.relu(combined @ W1.T + b1[None, :])
        y = jax.nn.relu(h @ W2.T + b2[None, :])
    return y, h


if __name__ == "__main__":
    key = jax.random.PRNGKey(0)
    k_x, k_w1, k_b1, k_w2, k_b2, k_h = jax.random.split(key, 6)

    # Deterministic synthetic parameters (PyTorch nn.Linear layouts).
    X = jax.random.normal(k_x, (SEQ_LEN, INPUT_SIZE), dtype=jnp.float32)
    W1 = jax.random.normal(k_w1, (HIDDEN_SIZE, INPUT_SIZE + HIDDEN_SIZE),
                           dtype=jnp.float32) * 0.2
    b1 = jax.random.normal(k_b1, (HIDDEN_SIZE,), dtype=jnp.float32) * 0.1
    W2 = jax.random.normal(k_w2, (OUTPUT_SIZE, HIDDEN_SIZE), dtype=jnp.float32) * 0.2
    b2 = jax.random.normal(k_b2, (OUTPUT_SIZE,), dtype=jnp.float32) * 0.1
    # Corresponds to `h = torch.rand(1, hidden_size)` when h is None.
    h0 = jax.random.uniform(k_h, (1, HIDDEN_SIZE), dtype=jnp.float32)

    y, h = rr_word_net_forward(X, W1, b1, W2, b2, h0)
    y = jax.block_until_ready(y)
    h = jax.block_until_ready(h)

    y_ref, h_ref = rr_word_net_reference(X, W1, b1, W2, b2, h0)
    assert jnp.allclose(y, y_ref, atol=1e-5, rtol=1e-5), (y, y_ref)
    assert jnp.allclose(h, h_ref, atol=1e-5, rtol=1e-5), (h, h_ref)

    print("KERNEL_OK")
</pallas_src>

<mosaic_0001>
module attributes {stable_mosaic.version = 11 : i64} {
  func.func @rnn_kernel(%arg0: memref<8x7xf32, #tpu.memory_space<vmem>>, %arg1: memref<7x16xf32, #tpu.memory_space<vmem>>, %arg2: memref<16x16xf32, #tpu.memory_space<vmem>>, %arg3: memref<1x16xf32, #tpu.memory_space<vmem>>, %arg4: memref<16x7xf32, #tpu.memory_space<vmem>>, %arg5: memref<1x7xf32, #tpu.memory_space<vmem>>, %arg6: memref<1x16xf32, #tpu.memory_space<vmem>>, %arg7: memref<1x7xf32, #tpu.memory_space<vmem>>, %arg8: memref<1x16xf32, #tpu.memory_space<vmem>>) attributes {dimension_semantics = [], scalar_prefetch = 0 : i64, scratch_operands = 0 : i64, tpu.core_type = #tpu.core_type<tc>} {
    %c0 = arith.constant 0 : index
    %c0_0 = arith.constant 0 : index
    %0 = vector.load %arg1[%c0, %c0_0] : memref<7x16xf32, #tpu.memory_space<vmem>>, vector<7x16xf32>
    %c0_1 = arith.constant 0 : index
    %c0_2 = arith.constant 0 : index
    %1 = vector.load %arg2[%c0_1, %c0_2] : memref<16x16xf32, #tpu.memory_space<vmem>>, vector<16x16xf32>
    %c0_3 = arith.constant 0 : index
    %c0_4 = arith.constant 0 : index
    %2 = vector.load %arg3[%c0_3, %c0_4] : memref<1x16xf32, #tpu.memory_space<vmem>>, vector<1x16xf32>
    %c0_5 = arith.constant 0 : index
    %c0_6 = arith.constant 0 : index
    %3 = vector.load %arg6[%c0_5, %c0_6] : memref<1x16xf32, #tpu.memory_space<vmem>>, vector<1x16xf32>
    %c0_7 = arith.constant 0 : index
    %c0_8 = arith.constant 0 : index
    %4 = vector.load %arg0[%c0_7, %c0_8] : memref<8x7xf32, #tpu.memory_space<vmem>>, vector<1x7xf32>
    %cst = arith.constant dense<0.000000e+00> : vector<1x16xf32>
    %5 = tpu.matmul %4, %0, %cst {dimension_numbers = #tpu.dot_dimension_numbers<[1], [0], [0], [1], [0, 0, 1, 1], [], []>} : vector<1x7xf32>, vector<7x16xf32>, vector<1x16xf32> -> vector<1x16xf32>
    %cst_9 = arith.constant dense<0.000000e+00> : vector<1x16xf32>
    %6 = tpu.matmul %3, %1, %cst_9 {dimension_numbers = #tpu.dot_dimension_numbers<[1], [0], [0], [1], [0, 0, 1, 1], [], []>} : vector<1x16xf32>, vector<16x16xf32>, vector<1x16xf32> -> vector<1x16xf32>
    %7 = arith.addf %5, %6 : vector<1x16xf32>
    %8 = arith.addf %7, %2 : vector<1x16xf32>
    %cst_10 = arith.constant 0.000000e+00 : f32
    %9 = vector.broadcast %cst_10 : f32 to vector<1x16xf32>
    %10 = arith.maximumf %8, %9 : vector<1x16xf32>
    %c1 = arith.constant 1 : index
    %c0_11 = arith.constant 0 : index
    %11 = vector.load %arg0[%c1, %c0_11] : memref<8x7xf32, #tpu.memory_space<vmem>>, vector<1x7xf32>
    %cst_12 = arith.constant dense<0.000000e+00> : vector<1x16xf32>
    %12 = tpu.matmul %11, %0, %cst_12 {dimension_numbers = #tpu.dot_dimension_numbers<[1], [0], [0], [1], [0, 0, 1, 1], [], []>} : vector<1x7xf32>, vector<7x16xf32>, vector<1x16xf32> -> vector<1x16xf32>
    %cst_13 = arith.constant dense<0.000000e+00> : vector<1x16xf32>
    %13 = tpu.matmul %10, %1, %cst_13 {dimension_numbers = #tpu.dot_dimension_numbers<[1], [0], [0], [1], [0, 0, 1, 1], [], []>} : vector<1x16xf32>, vector<16x16xf32>, vector<1x16xf32> -> vector<1x16xf32>
    %14 = arith.addf %12, %13 : vector<1x16xf32>
    %15 = arith.addf %14, %2 : vector<1x16xf32>
    %cst_14 = arith.constant 0.000000e+00 : f32
    %16 = vector.broadcast %cst_14 : f32 to vector<1x16xf32>
    %17 = arith.maximumf %15, %16 : vector<1x16xf32>
    %c2 = arith.constant 2 : index
    %c0_15 = arith.constant 0 : index
    %18 = vector.load %arg0[%c2, %c0_15] : memref<8x7xf32, #tpu.memory_space<vmem>>, vector<1x7xf32>
    %cst_16 = arith.constant dense<0.000000e+00> : vector<1x16xf32>
    %19 = tpu.matmul %18, %0, %cst_16 {dimension_numbers = #tpu.dot_dimension_numbers<[1], [0], [0], [1], [0, 0, 1, 1], [], []>} : vector<1x7xf32>, vector<7x16xf32>, vector<1x16xf32> -> vector<1x16xf32>
    %cst_17 = arith.constant dense<0.000000e+00> : vector<1x16xf32>
    %20 = tpu.matmul %17, %1, %cst_17 {dimension_numbers = #tpu.dot_dimension_numbers<[1], [0], [0], [1], [0, 0, 1, 1], [], []>} : vector<1x16xf32>, vector<16x16xf32>, vector<1x16xf32> -> vector<1x16xf32>
    %21 = arith.addf %19, %20 : vector<1x16xf32>
    %22 = arith.addf %21, %2 : vector<1x16xf32>
    %cst_18 = arith.constant 0.000000e+00 : f32
    %23 = vector.broadcast %cst_18 : f32 to vector<1x16xf32>
    %24 = arith.maximumf %22, %23 : vector<1x16xf32>
    %c3 = arith.constant 3 : index
    %c0_19 = arith.constant 0 : index
    %25 = vector.load %arg0[%c3, %c0_19] : memref<8x7xf32, #tpu.memory_space<vmem>>, vector<1x7xf32>
    %cst_20 = arith.constant dense<0.000000e+00> : vector<1x16xf32>
    %26 = tpu.matmul %25, %0, %cst_20 {dimension_numbers = #tpu.dot_dimension_numbers<[1], [0], [0], [1], [0, 0, 1, 1], [], []>} : vector<1x7xf32>, vector<7x16xf32>, vector<1x16xf32> -> vector<1x16xf32>
    %cst_21 = arith.constant dense<0.000000e+00> : vector<1x16xf32>
    %27 = tpu.matmul %24, %1, %cst_21 {dimension_numbers = #tpu.dot_dimension_numbers<[1], [0], [0], [1], [0, 0, 1, 1], [], []>} : vector<1x16xf32>, vector<16x16xf32>, vector<1x16xf32> -> vector<1x16xf32>
    %28 = arith.addf %26, %27 : vector<1x16xf32>
    %29 = arith.addf %28, %2 : vector<1x16xf32>
    %cst_22 = arith.constant 0.000000e+00 : f32
    %30 = vector.broadcast %cst_22 : f32 to vector<1x16xf32>
    %31 = arith.maximumf %29, %30 : vector<1x16xf32>
    %c4 = arith.constant 4 : index
    %c0_23 = arith.constant 0 : index
    %32 = vector.load %arg0[%c4, %c0_23] : memref<8x7xf32, #tpu.memory_space<vmem>>, vector<1x7xf32>
    %cst_24 = arith.constant dense<0.000000e+00> : vector<1x16xf32>
    %33 = tpu.matmul %32, %0, %cst_24 {dimension_numbers = #tpu.dot_dimension_numbers<[1], [0], [0], [1], [0, 0, 1, 1], [], []>} : vector<1x7xf32>, vector<7x16xf32>, vector<1x16xf32> -> vector<1x16xf32>
    %cst_25 = arith.constant dense<0.000000e+00> : vector<1x16xf32>
    %34 = tpu.matmul %31, %1, %cst_25 {dimension_numbers = #tpu.dot_dimension_numbers<[1], [0], [0], [1], [0, 0, 1, 1], [], []>} : vector<1x16xf32>, vector<16x16xf32>, vector<1x16xf32> -> vector<1x16xf32>
    %35 = arith.addf %33, %34 : vector<1x16xf32>
    %36 = arith.addf %35, %2 : vector<1x16xf32>
    %cst_26 = arith.constant 0.000000e+00 : f32
    %37 = vector.broadcast %cst_26 : f32 to vector<1x16xf32>
    %38 = arith.maximumf %36, %37 : vector<1x16xf32>
    %c5 = arith.constant 5 : index
    %c0_27 = arith.constant 0 : index
    %39 = vector.load %arg0[%c5, %c0_27] : memref<8x7xf32, #tpu.memory_space<vmem>>, vector<1x7xf32>
    %cst_28 = arith.constant dense<0.000000e+00> : vector<1x16xf32>
    %40 = tpu.matmul %39, %0, %cst_28 {dimension_numbers = #tpu.dot_dimension_numbers<[1], [0], [0], [1], [0, 0, 1, 1], [], []>} : vector<1x7xf32>, vector<7x16xf32>, vector<1x16xf32> -> vector<1x16xf32>
    %cst_29 = arith.constant dense<0.000000e+00> : vector<1x16xf32>
    %41 = tpu.matmul %38, %1, %cst_29 {dimension_numbers = #tpu.dot_dimension_numbers<[1], [0], [0], [1], [0, 0, 1, 1], [], []>} : vector<1x16xf32>, vector<16x16xf32>, vector<1x16xf32> -> vector<1x16xf32>
    %42 = arith.addf %40, %41 : vector<1x16xf32>
    %43 = arith.addf %42, %2 : vector<1x16xf32>
    %cst_30 = arith.constant 0.000000e+00 : f32
    %44 = vector.broadcast %cst_30 : f32 to vector<1x16xf32>
    %45 = arith.maximumf %43, %44 : vector<1x16xf32>
    %c6 = arith.constant 6 : index
    %c0_31 = arith.constant 0 : index
    %46 = vector.load %arg0[%c6, %c0_31] : memref<8x7xf32, #tpu.memory_space<vmem>>, vector<1x7xf32>
    %cst_32 = arith.constant dense<0.000000e+00> : vector<1x16xf32>
    %47 = tpu.matmul %46, %0, %cst_32 {dimension_numbers = #tpu.dot_dimension_numbers<[1], [0], [0], [1], [0, 0, 1, 1], [], []>} : vector<1x7xf32>, vector<7x16xf32>, vector<1x16xf32> -> vector<1x16xf32>
    %cst_33 = arith.constant dense<0.000000e+00> : vector<1x16xf32>
    %48 = tpu.matmul %45, %1, %cst_33 {dimension_numbers = #tpu.dot_dimension_numbers<[1], [0], [0], [1], [0, 0, 1, 1], [], []>} : vector<1x16xf32>, vector<16x16xf32>, vector<1x16xf32> -> vector<1x16xf32>
    %49 = arith.addf %47, %48 : vector<1x16xf32>
    %50 = arith.addf %49, %2 : vector<1x16xf32>
    %cst_34 = arith.constant 0.000000e+00 : f32
    %51 = vector.broadcast %cst_34 : f32 to vector<1x16xf32>
    %52 = arith.maximumf %50, %51 : vector<1x16xf32>
    %c7 = arith.constant 7 : index
    %c0_35 = arith.constant 0 : index
    %53 = vector.load %arg0[%c7, %c0_35] : memref<8x7xf32, #tpu.memory_space<vmem>>, vector<1x7xf32>
    %cst_36 = arith.constant dense<0.000000e+00> : vector<1x16xf32>
    %54 = tpu.matmul %53, %0, %cst_36 {dimension_numbers = #tpu.dot_dimension_numbers<[1], [0], [0], [1], [0, 0, 1, 1], [], []>} : vector<1x7xf32>, vector<7x16xf32>, vector<1x16xf32> -> vector<1x16xf32>
    %cst_37 = arith.constant dense<0.000000e+00> : vector<1x16xf32>
    %55 = tpu.matmul %52, %1, %cst_37 {dimension_numbers = #tpu.dot_dimension_numbers<[1], [0], [0], [1], [0, 0, 1, 1], [], []>} : vector<1x16xf32>, vector<16x16xf32>, vector<1x16xf32> -> vector<1x16xf32>
    %56 = arith.addf %54, %55 : vector<1x16xf32>
    %57 = arith.addf %56, %2 : vector<1x16xf32>
    %cst_38 = arith.constant 0.000000e+00 : f32
    %58 = vector.broadcast %cst_38 : f32 to vector<1x16xf32>
    %59 = arith.maximumf %57, %58 : vector<1x16xf32>
    %c0_39 = arith.constant 0 : index
    %c0_40 = arith.constant 0 : index
    %60 = vector.load %arg4[%c0_39, %c0_40] : memref<16x7xf32, #tpu.memory_space<vmem>>, vector<16x7xf32>
    %cst_41 = arith.constant dense<0.000000e+00> : vector<1x7xf32>
    %61 = tpu.matmul %59, %60, %cst_41 {dimension_numbers = #tpu.dot_dimension_numbers<[1], [0], [0], [1], [0, 0, 1, 1], [], []>} : vector<1x16xf32>, vector<16x7xf32>, vector<1x7xf32> -> vector<1x7xf32>
    %c0_42 = arith.constant 0 : index
    %c0_43 = arith.constant 0 : index
    %62 = vector.load %arg5[%c0_42, %c0_43] : memref<1x7xf32, #tpu.memory_space<vmem>>, vector<1x7xf32>
    %63 = arith.addf %61, %62 : vector<1x7xf32>
    %cst_44 = arith.constant 0.000000e+00 : f32
    %64 = vector.broadcast %cst_44 : f32 to vector<1x7xf32>
    %65 = arith.maximumf %63, %64 : vector<1x7xf32>
    %c0_45 = arith.constant 0 : index
    %c0_46 = arith.constant 0 : index
    %66 = vector.load %arg7[%c0_45, %c0_46] : memref<1x7xf32, #tpu.memory_space<vmem>>, vector<1x7xf32>
    tpu.vector_store %arg7[%c0_45, %c0_46], %65 {strides = array<i32>} : memref<1x7xf32, #tpu.memory_space<vmem>>, vector<1x7xf32>,
    %c0_47 = arith.constant 0 : index
    %c0_48 = arith.constant 0 : index
    %67 = vector.load %arg8[%c0_47, %c0_48] : memref<1x16xf32, #tpu.memory_space<vmem>>, vector<1x16xf32>
    tpu.vector_store %arg8[%c0_47, %c0_48], %59 {strides = array<i32>} : memref<1x16xf32, #tpu.memory_space<vmem>>, vector<1x16xf32>,
    return
  }
}

</mosaic_0001>

<bundles_post_ra>
// kernel: tpu_custom_call.1
= control target key start
LH: loop header
LB: loop body
LE: loop exit
PB: predicated region body
PF: predicated region fallthrough
CT: control target
= control target key end

     0   :  { %14 = vsyncpa [#allocation3], 0  ;;  %s1869_s0 = inlined_call_operand.vmem [shape: f32[8,7], index: 0, kind: input, shape index: {}]   ;;  %s1870_s1 = inlined_call_operand.hbm [shape: f32[7,16], index: 1, kind: input, shape index: {}]   ;;  %s1871_s2 = inlined_call_operand.vmem [shape: f32[16,16], index: 2, kind: input, shape index: {}]   ;;  %s1872_s3 = inlined_call_operand.vmem [shape: f32[1,16], index: 3, kind: input, shape index: {}]   ;;  %s1873_s4 = inlined_call_operand.vmem [shape: f32[16,7], index: 4, kind: input, shape index: {}]   ;;  %s1874_s5 = inlined_call_operand.vmem [shape: f32[1,7], index: 5, kind: input, shape index: {}]   ;;  %s1875_s6 = inlined_call_operand.vmem [shape: f32[1,16], index: 6, kind: input, shape index: {}]   ;;  %s1876_s7 = inlined_call_operand.hbm [shape: f32[1,7], index: 7, kind: output, shape index: {0}]   ;;  %s1877_s8 = inlined_call_operand.hbm [shape: f32[1,16], index: 8, kind: output, shape index: {1}]  }
   0x1   :  { %15 = vsyncpa [#allocation4], 0 }
   0x2   :  { %16 = vsyncpa [#allocation7], 0  ;;  %s1631_s27 = smov [#allocation2]   ;;  %s1559_s9 = scalar_lea.hbm %s1870_s1, 128 }
   0x3   :  { %s25_s28 = sshll.u32 %s1631_s27, 4  ;;  %p1560_p0 = scmp.ne.s32.totalorder %s1870_s1, %s1559_s9  ;;  %s26_s28 = int_to_ptr.vmem [resolvable:$true] %s25_s28 }
   0x4   :  { %p1563_p1 = scmp.lt.u32.totalorder %s1559_s9, %s1870_s1 }
   0x6   :  { %p1565_p2 = pnand %p1563_p1, %p1560_p0 }
   0x8   :  { %1568 = shalt.err (!%p1565_p2)
}
   0x9   :  { %s1569_s14 = scalar_lea.vmem %s26_s28, 128  ;;  %p1574_p4 = scmp.lt.s32.totalorder %s26_s28, %s26_s28 }
   0xa   :  { %p1570_p3 = scmp.ne.s32.totalorder %s26_s28, %s1569_s14  ;;  %p1575_p5 = scmp.lt.s32.totalorder %s1569_s14, %s1569_s14 }
   0xc   :  { %p1576_p6 = por %p1575_p5, %p1574_p4 }
   0xe   :  { %p1577_p7 = pnand %p1576_p6, %p1570_p3 }
  0x10   :  { %1580 = shalt.err (!%p1577_p7)
}
  0x11   :  { %28 = dma.hbm_to_vmem [thread:$0]  %s1870_s1, 128, %s26_s28, [#allocation3]  }
  0x12   :  { %1625 = dma.done.wait [#allocation3], 128  }
  0x13   :  { %1626 = vsyncadd [#allocation3], 4294967168  ;;  %v1632_v0 = vmov 0.0|0.0   ;;  %v1633_v1 = vmov 0.0   ;;  %vm1634_vm0 = vmmov 0   ;;  %vm126_vm1 = vcmask 1046528  }
  0x14   :  { %1526 = vmatprep.subr.bf16.mxu0 %v1632_v0  ;;  %1430 = vmatprep.subr.mxu1 %v1633_v1  ;;  %vm122_vm2 = vcmask 56320   ;;  %v43_v2 = vld [vmem:[%s1871_s2] sm:$0xff]  ;;  %v44_v3 = vld [vmem:[%s1871_s2 + $0x8] sm:$0xff]  ;;  %vm48_vm3 = vcmask 130048   ;;  %vm1324_vm4 = vcmask 122880   ;;  %s1635_s18 = smov [#allocation6]  }
  0x15   :  { %1432 = vmatprep.mubr.msk.f32.mxu1 %vm1634_vm0, %v1633_v1  ;;  %1427 = vmatprep.mubr.msk.f32.mxu0 %vm1634_vm0, %v1633_v1  ;;  %v1706_v4 = vld [vmem:[#allocation2] sm:$0x7f]  ;;  %v1708_v5 = vpack.c.bf16 %v44_v3, %v43_v2  ;;  %v1096_v59 = vld [vmem:[%s1869_s0 + $0x7] sm:$0x1]  ;;  %s1342_s1 = sshll.u32 %s1635_s18, 4  ;;  %s1343_s1 = int_to_ptr.vmem [resolvable:$true] %s1342_s1 }
  0x16   :  { %1431 = vmatpush3.msk.msra.mxu1 %vm126_vm1, %v1706_v4  ;;  %v47_v6 = vld [vmem:[%s1869_s0] sm:$0x1]  ;;  %v202_v8 = vld [vmem:[%s1869_s0 + $0x1] sm:$0x1]  ;;  %v351_v19 = vld [vmem:[%s1869_s0 + $0x2] sm:$0x1]  ;;  %p1586_p9 = scmp.lt.s32.totalorder %s1343_s1, %s1343_s1 }
  0x17   :  { %1433 = vmatmul.mubr.msk.f32.vlgmr.msra.gmra.mrb[0].mxu1 %vm122_vm2, %v47_v6  ;;  %1529 = vmatprep.subr.bf16.mxu1 %v1632_v0  ;;  %v46_v7 = vld [vmem:[%s1875_s6] sm:$0x1]  ;;  %v500_v27 = vld [vmem:[%s1869_s0 + $0x3] sm:$0x1]  ;;  %v649_v35 = vld [vmem:[%s1869_s0 + $0x4] sm:$0x1] }
  0x18   :  { %1528 = vmatpush3.bf16.msra.mxu0 %v1708_v5  ;;  %1531 = vmatpush3.bf16.msra.mxu1 %v1708_v5  ;;  %v1744_v11 = vld [vmem:[%s1872_s3] sm:$0x1]  ;;  %v798_v43 = vld [vmem:[%s1869_s0 + $0x5] sm:$0x1]  ;;  %v947_v51 = vld [vmem:[%s1869_s0 + $0x6] sm:$0x1] }
  0x19   :  { %1442 = vmatprep.subr.mxu0 %v1633_v1  ;;  %1439 = vmatprep.mubr.msk.f32.mxu1 %vm1634_vm0, %v1633_v1  ;;  %s1581_s19 = scalar_lea.vmem %s1343_s1, 16  ;;  %s1585_s20 = scalar_lea.vmem %s1343_s1, 32 }
  0x1a   :  { %1532 = vmatprep.subr.bf16.mxu1 %v1632_v0  ;;  %p1582_p8 = scmp.ne.s32.totalorder %s1343_s1, %s1581_s19  ;;  %p1587_p10 = scmp.lt.s32.totalorder %s1585_s20, %s1581_s19 }
  0x1b   :  { %1428 = vmatmul.mubr.msk.f32.vlgmr.msra.gmra.mrb[0].mxu0 %vm48_vm3, %v46_v7 }
  0x1c   :  { %1443 = vmatpush3.msk.msra.mxu0 %vm126_vm1, %v1706_v4  ;;  %1444 = vmatprep.mubr.msk.f32.mxu0 %vm1634_vm0, %v1633_v1  ;;  %p1588_p11 = por %p1587_p10, %p1586_p9 }
  0x1d   :  { %1454 = vmatprep.subr.mxu0 %v1633_v1 }
  0x1e   :  { %p1589_p12 = pnand %p1588_p11, %p1582_p8 }
  0x1f   :  { %1445 = vmatmul.mubr.msk.f32.vlgmr.msra.gmra.mrb[2].mxu0 %vm122_vm2, %v202_v8 }
  0x20   :  { %1455 = vmatpush3.msk.msra.mxu0 %vm126_vm1, %v1706_v4  ;;  %1456 = vmatprep.mubr.msk.f32.mxu0 %vm1634_vm0, %v1633_v1 }
  0x21   :  { %1466 = vmatprep.subr.mxu0 %v1633_v1 }
  0x23   :  { %1457 = vmatmul.mubr.msk.f32.vlgmr.msra.gmra.mrb[4].mxu0 %vm122_vm2, %v351_v19 }
  0x24   :  { %1467 = vmatpush3.msk.msra.mxu0 %vm126_vm1, %v1706_v4  ;;  %1468 = vmatprep.mubr.msk.f32.mxu0 %vm1634_vm0, %v1633_v1 }
  0x25   :  { %1478 = vmatprep.subr.mxu0 %v1633_v1 }
  0x27   :  { %1469 = vmatmul.mubr.msk.f32.vlgmr.msra.gmra.mrb[6].mxu0 %vm122_vm2, %v500_v27 }
  0x28   :  { %1479 = vmatpush3.msk.msra.mxu0 %vm126_vm1, %v1706_v4  ;;  %1480 = vmatprep.mubr.msk.f32.mxu0 %vm1634_vm0, %v1633_v1 }
  0x29   :  { %1490 = vmatprep.subr.mxu0 %v1633_v1 }
  0x2b   :  { %1481 = vmatmul.mubr.msk.f32.vlgmr.msra.gmra.mrb[8].mxu0 %vm122_vm2, %v649_v35 }
  0x2c   :  { %1491 = vmatpush3.msk.msra.mxu0 %vm126_vm1, %v1706_v4  ;;  %1492 = vmatprep.mubr.msk.f32.mxu0 %vm1634_vm0, %v1633_v1 }
  0x2d   :  { %1502 = vmatprep.subr.mxu0 %v1633_v1 }
  0x2f   :  { %1493 = vmatmul.mubr.msk.f32.vlgmr.msra.gmra.mrb[10].mxu0 %vm122_vm2, %v798_v43 }
  0x30   :  { %1503 = vmatpush3.msk.msra.mxu0 %vm126_vm1, %v1706_v4  ;;  %1504 = vmatprep.mubr.msk.f32.mxu0 %vm1634_vm0, %v1633_v1 }
  0x31   :  { %1514 = vmatprep.subr.mxu0 %v1633_v1 }
  0x33   :  { %1505 = vmatmul.mubr.msk.f32.vlgmr.msra.gmra.mrb[12].mxu0 %vm122_vm2, %v947_v51 }
  0x34   :  { %1515 = vmatpush3.msk.msra.mxu0 %vm126_vm1, %v1706_v4  ;;  %1516 = vmatprep.mubr.msk.f32.mxu0 %vm1634_vm0, %v1633_v1  ;;  %v1245_v4 = vld [vmem:[%s1873_s4] sm:$0xff] }
  0x37   :  { %1517 = vmatmul.mubr.msk.f32.vlgmr.msra.gmra.mrb[14].mxu0 %vm122_vm2, %v1096_v59 }
  0xea   :  { %v196_v9 = vpop.f32.mrb[0].mxu1 }
  0xeb   :  { %v1434_v10 = vpop.f32.mrb[1].mxu1 }
  0xee   :  { %v118_v12 = vpop.f32.mrb[0].mxu0 }
  0xef   :  { %v197_v13 = vadd.f32 %v196_v9, %v118_v12  ;;  %v1429_v14 = vpop.f32.mrb[1].mxu0 }
  0xf1   :  { %v200_v15 = vadd.f32 %v197_v13, %v1744_v11 }
  0xf2   :  { %v345_v17 = vpop.f32.mrb[2].mxu0 }
  0xf3   :  { %v201_v16 = vmax.f32 %v200_v15, 0.0  ;;  %v1446_v18 = vpop.f32.mrb[3].mxu0 }
  0xf5   :  { %1440 = vmatmul.mubr.msk.f32.vlgmr.msra.gmra.mrb[2].mxu1 %vm48_vm3, %v201_v16 }
  0xf6   :  { %1534 = vmatpush3.bf16.msra.mxu1 %v1708_v5  ;;  %1451 = vmatprep.mubr.msk.f32.mxu1 %vm1634_vm0, %v1633_v1  ;;  %v494_v25 = vpop.f32.mrb[4].mxu0 }
  0xf7   :  { %1535 = vmatprep.subr.bf16.mxu1 %v1632_v0  ;;  %v1458_v26 = vpop.f32.mrb[5].mxu0 }
  0xfa   :  { %v643_v33 = vpop.f32.mrb[6].mxu0 }
  0xfb   :  { %v1470_v34 = vpop.f32.mrb[7].mxu0 }
  0xfe   :  { %v792_v41 = vpop.f32.mrb[8].mxu0 }
  0xff   :  { %v1482_v42 = vpop.f32.mrb[9].mxu0 }
 0x102   :  { %v941_v49 = vpop.f32.mrb[10].mxu0 }
 0x103   :  { %v1494_v50 = vpop.f32.mrb[11].mxu0 }
 0x106   :  { %v1090_v57 = vpop.f32.mrb[12].mxu0 }
 0x107   :  { %v1506_v58 = vpop.f32.mrb[13].mxu0 }
 0x1c8   :  { %v272_v20 = vpop.f32.mrb[2].mxu1 }
 0x1c9   :  { %v346_v21 = vadd.f32 %v345_v17, %v272_v20  ;;  %v1441_v22 = vpop.f32.mrb[3].mxu1 }
 0x1cb   :  { %v349_v23 = vadd.f32 %v346_v21, %v1744_v11 }
 0x1cd   :  { %v350_v24 = vmax.f32 %v349_v23, 0.0 }
 0x1cf   :  { %1452 = vmatmul.mubr.msk.f32.vlgmr.msra.gmra.mrb[4].mxu1 %vm48_vm3, %v350_v24 }
 0x1d0   :  { %1537 = vmatpush3.bf16.msra.mxu1 %v1708_v5  ;;  %1463 = vmatprep.mubr.msk.f32.mxu1 %vm1634_vm0, %v1633_v1 }
 0x1d1   :  { %1538 = vmatprep.subr.bf16.mxu1 %v1632_v0 }
 0x2a2   :  { %v421_v28 = vpop.f32.mrb[4].mxu1 }
 0x2a3   :  { %v495_v29 = vadd.f32 %v494_v25, %v421_v28  ;;  %v1453_v30 = vpop.f32.mrb[5].mxu1 }
 0x2a5   :  { %v498_v31 = vadd.f32 %v495_v29, %v1744_v11 }
 0x2a7   :  { %v499_v32 = vmax.f32 %v498_v31, 0.0 }
 0x2a9   :  { %1464 = vmatmul.mubr.msk.f32.vlgmr.msra.gmra.mrb[6].mxu1 %vm48_vm3, %v499_v32 }
 0x2aa   :  { %1540 = vmatpush3.bf16.msra.mxu1 %v1708_v5  ;;  %1475 = vmatprep.mubr.msk.f32.mxu1 %vm1634_vm0, %v1633_v1 }
 0x2ab   :  { %1541 = vmatprep.subr.bf16.mxu1 %v1632_v0 }
 0x37c   :  { %v570_v36 = vpop.f32.mrb[6].mxu1 }
 0x37d   :  { %v644_v37 = vadd.f32 %v643_v33, %v570_v36  ;;  %v1465_v38 = vpop.f32.mrb[7].mxu1 }
 0x37f   :  { %v647_v39 = vadd.f32 %v644_v37, %v1744_v11 }
 0x381   :  { %v648_v40 = vmax.f32 %v647_v39, 0.0 }
 0x383   :  { %1476 = vmatmul.mubr.msk.f32.vlgmr.msra.gmra.mrb[8].mxu1 %vm48_vm3, %v648_v40 }
 0x384   :  { %1543 = vmatpush3.bf16.msra.mxu1 %v1708_v5  ;;  %1487 = vmatprep.mubr.msk.f32.mxu1 %vm1634_vm0, %v1633_v1 }
 0x385   :  { %1544 = vmatprep.subr.bf16.mxu1 %v1632_v0 }
 0x456   :  { %v719_v44 = vpop.f32.mrb[8].mxu1 }
 0x457   :  { %v793_v45 = vadd.f32 %v792_v41, %v719_v44  ;;  %v1477_v46 = vpop.f32.mrb[9].mxu1 }
 0x459   :  { %v796_v47 = vadd.f32 %v793_v45, %v1744_v11 }
 0x45b   :  { %v797_v48 = vmax.f32 %v796_v47, 0.0 }
 0x45d   :  { %1488 = vmatmul.mubr.msk.f32.vlgmr.msra.gmra.mrb[10].mxu1 %vm48_vm3, %v797_v48 }
 0x45e   :  { %1546 = vmatpush3.bf16.msra.mxu1 %v1708_v5  ;;  %1499 = vmatprep.mubr.msk.f32.mxu1 %vm1634_vm0, %v1633_v1 }
 0x45f   :  { %1547 = vmatprep.subr.bf16.mxu1 %v1632_v0 }
 0x530   :  { %v868_v52 = vpop.f32.mrb[10].mxu1 }
 0x531   :  { %v942_v53 = vadd.f32 %v941_v49, %v868_v52  ;;  %v1489_v54 = vpop.f32.mrb[11].mxu1 }
 0x533   :  { %v945_v55 = vadd.f32 %v942_v53, %v1744_v11 }
 0x535   :  { %v946_v56 = vmax.f32 %v945_v55, 0.0 }
 0x537   :  { %1500 = vmatmul.mubr.msk.f32.vlgmr.msra.gmra.mrb[12].mxu1 %vm48_vm3, %v946_v56 }
 0x538   :  { %1549 = vmatpush3.bf16.msra.mxu1 %v1708_v5  ;;  %1511 = vmatprep.mubr.msk.f32.mxu1 %vm1634_vm0, %v1633_v1  ;;  %v1246_v5 = vld [vmem:[%s1873_s4 + $0x8] sm:$0xff] }
 0x539   :  { %1550 = vmatprep.subr.bf16.mxu1 %v1632_v0  ;;  %v1239_v0 = vpop.f32.mrb[14].mxu0  ;;  %v1551_v6 = vpack.c.bf16 %v1246_v5, %v1245_v4 }
 0x53a   :  { %v1518_v3 = vpop.f32.mrb[15].mxu0 }
 0x60a   :  { %v1017_v60 = vpop.f32.mrb[12].mxu1 }
 0x60b   :  { %v1091_v61 = vadd.f32 %v1090_v57, %v1017_v60  ;;  %v1501_v62 = vpop.f32.mrb[13].mxu1 }
 0x60d   :  { %v1094_v63 = vadd.f32 %v1091_v61, %v1744_v11 }
 0x60f   :  { %v1095_v2 = vmax.f32 %v1094_v63, 0.0 }
 0x611   :  { %1512 = vmatmul.mubr.msk.f32.vlgmr.msra.gmra.mrb[14].mxu1 %vm48_vm3, %v1095_v2 }
 0x612   :  { %1523 = vmatprep.mubr.msk.f32.mxu1 %vm1634_vm0, %v1633_v1  ;;  %1552 = vmatpush3.bf16.msra.mxu1 %v1551_v6 }
 0x6e4   :  { %v1166_v7 = vpop.f32.mrb[14].mxu1 }
 0x6e5   :  { %v1240_v8 = vadd.f32 %v1239_v0, %v1166_v7  ;;  %v1513_v9 = vpop.f32.mrb[15].mxu1 }
 0x6e7   :  { %v1243_v10 = vadd.f32 %v1240_v8, %v1744_v11 }
 0x6e9   :  { %v1244_v12 = vmax.f32 %v1243_v10, 0.0 }
 0x6eb   :  { %1524 = vmatmul.mubr.msk.f32.vlgmr.msra.gmra.mrb[16].mxu1 %vm48_vm3, %v1244_v12  ;;  %1325 = vst.msk [vmem:[#allocation6] sm:$0x1] %vm1324_vm4, %v1244_v12 }
 0x6ec   :  { %1592 = shalt.err (!%p1589_p12)
}
 0x6ed   :  { %s1593_s22 = scalar_lea.hbm %s1877_s8, 16 }
 0x6ee   :  { %p1594_p13 = scmp.ne.s32.totalorder %s1877_s8, %s1593_s22  ;;  %p1597_p0 = scmp.lt.u32.totalorder %s1593_s22, %s1877_s8 }
 0x6f0   :  { %p1599_p1 = pnand %p1597_p0, %p1594_p13 }
 0x6f2   :  { %1602 = shalt.err (!%p1599_p1)
}
 0x6f3   :  { %1345 = dma.vmem_to_hbm [thread:$0]  %s1343_s1, 16, %s1877_s8, [#allocation7]   ;;  %v1247_v1 = vld [vmem:[%s1874_s5] sm:$0x1]  ;;  %vm1322_vm5 = vcmask 49152  }
 0x6f4   :  { %s1636_s28 = smov [#allocation5]  }
 0x6f5   :  { %s1332_s29 = sshll.u32 %s1636_s28, 4  ;;  %s1333_s29 = int_to_ptr.vmem [resolvable:$true] %s1332_s29 }
 0x6f6   :  { %s1603_s30 = scalar_lea.vmem %s1333_s29, 16  ;;  %s1607_s9 = scalar_lea.vmem %s1333_s29, 32 }
 0x6f7   :  { %p1604_p2 = scmp.ne.s32.totalorder %s1333_s29, %s1603_s30  ;;  %p1608_p3 = scmp.lt.s32.totalorder %s1333_s29, %s1333_s29 }
 0x6f8   :  { %p1609_p4 = scmp.lt.s32.totalorder %s1607_s9, %s1603_s30 }
 0x6fa   :  { %p1610_p5 = por %p1609_p4, %p1608_p3 }
 0x6fc   :  { %p1611_p6 = pnand %p1610_p5, %p1604_p2 }
 0x7be   :  { %v1317_v11 = vpop.f32.mrb[16].mxu1 }
 0x7bf   :  { %v1318_v13 = vadd.f32 %v1317_v11, %v1247_v1  ;;  %v1525_v14 = vpop.f32.mrb[17].mxu1 }
 0x7c1   :  { %v1321_v15 = vmax.f32 %v1318_v13, 0.0 }
 0x7c3   :  { %1323 = vst.msk [vmem:[#allocation5] sm:$0x1] %vm1322_vm5, %v1321_v15 }
 0x7c4   :  { %1614 = shalt.err (!%p1611_p6)
}
 0x7c5   :  { %s1615_s5 = scalar_lea.hbm %s1876_s7, 16 }
 0x7c6   :  { %p1616_p7 = scmp.ne.s32.totalorder %s1876_s7, %s1615_s5  ;;  %p1619_p8 = scmp.lt.u32.totalorder %s1615_s5, %s1876_s7 }
 0x7c8   :  { %p1621_p9 = pnand %p1619_p8, %p1616_p7 }
 0x7ca   :  { %1624 = shalt.err (!%p1621_p9)
}
 0x7cb   :  { %1335 = dma.vmem_to_hbm [thread:$0]  %s1333_s29, 16, %s1876_s7, [#allocation4]  }
 0x7cc   :  { %1627 = dma.done.wait [#allocation4], 16  }
 0x7cd   :  { %1628 = vsyncadd [#allocation4], 4294967280 }
 0x7ce   :  { %1629 = dma.done.wait [#allocation7], 16  }
 0x7cf   :  { %1630 = vsyncadd [#allocation7], 4294967280 }
 0x7d0   :  { %1352 = vsyncpa [#allocation3], 1 }
 0x7d1   :  { %1353 = vsyncpa [#allocation4], 1 }
 0x7d2   :  { %1354 = vsyncpa [#allocation7], 1 }

</bundles_post_ra>
